<compile_context>
chip_gen: v6e
topology: v6e:2x2x1
jax: 0.10.0
libtpu: 0.0.40
codegen_flags: <defaults>
</compile_context>

<pallas_src>
import jax
import jax.numpy as jnp
from jax.experimental import pallas as pl
from jax.experimental.pallas import tpu as pltpu


def _round_up(x, m):
    return (x + m - 1) // m * m


def _pick_tile(padded_dim, unit, max_tile):
    """Largest multiple of `unit` that divides `padded_dim` and is <= max_tile."""
    n_units = padded_dim // unit
    max_units = max(1, max_tile // unit)
    best = 1
    for d in range(1, n_units + 1):
        if n_units % d == 0 and d <= max_units:
            best = d
    return best * unit


def _maybe_pad2d(a, rows, cols):
    pr, pc = rows - a.shape[0], cols - a.shape[1]
    if pr or pc:
        return jnp.pad(a, ((0, pr), (0, pc)))
    return a


def fused_linear_kernel(x_ref, w_ref, b_ref, o_ref):
    """One (tm, tn) f32 output tile, accumulated in place across the K axis."""
    k = pl.program_id(2)

    @pl.when(k == 0)
    def _init():
        o_ref[...] = jnp.zeros_like(o_ref)

    # bf16 operands, f32 accumulation on the MXU, directly into the resident
    # output block (no separate accumulator scratch).
    o_ref[...] += jnp.dot(x_ref[...], w_ref[...],
                          preferred_element_type=jnp.float32)

    @pl.when(k == pl.num_programs(2) - 1)
    def _finalize():
        # Fused epilogue: bias add + ReLU.
        # Dropout is identity in eval/inference mode (no-op here).
        o_ref[...] = jnp.maximum(o_ref[...] + b_ref[...], 0.0)


def _fused_linear_call(xp, wp, bp, tm, tn, tk):
    """pallas_call on already tile-aligned, bf16 operands; returns f32 (Mp, Np)."""
    Mp, Kp = xp.shape
    _, Np = wp.shape
    grid = (Mp // tm, Np // tn, Kp // tk)

    flops = 2 * Mp * Np * Kp
    bytes_accessed = (
        Mp * Kp * 2 * grid[1]      # x (bf16) re-read once per N block
        + Kp * Np * 2 * grid[0]    # w (bf16) re-read once per M block
        + Np * 4 * grid[0]         # bias per M block
        + Mp * Np * 4)             # f32 output written once

    return pl.pallas_call(
        fused_linear_kernel,
        out_shape=jax.ShapeDtypeStruct((Mp, Np), jnp.float32),
        grid_spec=pltpu.PrefetchScalarGridSpec(
            num_scalar_prefetch=0,
            grid=grid,
            in_specs=[
                pl.BlockSpec((tm, tk), lambda i, j, k: (i, k)),   # x
                pl.BlockSpec((tk, tn), lambda i, j, k: (k, j)),   # w
                pl.BlockSpec((1, tn), lambda i, j, k: (0, j)),    # bias
            ],
            out_specs=pl.BlockSpec((tm, tn), lambda i, j, k: (i, j)),
        ),
        compiler_params=pltpu.CompilerParams(
            dimension_semantics=("parallel", "parallel", "arbitrary")),
        cost_estimate=pl.CostEstimate(
            flops=flops, transcendentals=0, bytes_accessed=bytes_accessed),
    )(xp, wp, bp)


class FusedLinearTPU:
    """Eval-mode FusedLinear (Linear -> ReLU -> Dropout == identity).

    Weights are pre-cast to bf16 and pre-padded to tile-aligned shapes once at
    construction, so the per-call hot path only (conditionally) pads x.
    """

    def __init__(self, w, b, *, tm=256, tn=256, tk=1024):
        K, N = w.shape
        assert b.shape == (N,)
        self.K, self.N = K, N
        self.tm_max = tm

        Kp = _round_up(K, 128)
        Np = _round_up(N, 128)
        self.tk = _pick_tile(Kp, 128, tk)
        self.tn = _pick_tile(Np, 128, tn)
        # Megacore (v7x has 2 TensorCores): prefer >= 2 blocks on the N
        # ("parallel") axis so the grid can be sharded across cores.
        if Np // self.tn < 2 and Np // 128 >= 2:
            self.tn = _pick_tile(Np, 128, max(128, (Np // 2 // 128) * 128))
        self.Kp, self.Np = Kp, Np

        # One-time pad + cast (off the per-call hot path).
        self.wp = _maybe_pad2d(jnp.asarray(w).astype(jnp.bfloat16), Kp, Np)
        self.bp = _maybe_pad2d(
            jnp.asarray(b).reshape(1, N).astype(jnp.float32), 1, Np)

    def __call__(self, x):
        M, K = x.shape
        assert K == self.K
        # bf16 packs 2 rows per sublane -> M tiles are multiples of 16.
        Mp = _round_up(M, 16)
        tm = min(self.tm_max, Mp)
        # Limit zero-row padding waste to ~25% by shrinking tm if needed.
        while tm > 16 and _round_up(Mp, tm) * 4 > Mp * 5:
            tm = max(16, _round_up(tm // 2, 16))
        Mp = _round_up(Mp, tm)

        # K padding keeps the reduction correct (Pallas does not zero OOB reads).
        # TODO(synk): mask the K tail in-kernel instead, so unaligned-K inputs
        # never need a host-side pad copy of x.
        xp = _maybe_pad2d(jnp.asarray(x).astype(jnp.bfloat16), Mp, self.Kp)

        out = _fused_linear_call(xp, self.wp, self.bp, tm, self.tn, self.tk)
        if Mp != M or self.Np != self.N:
            out = out[:M, :self.N]
        return out.astype(x.dtype)


def fused_linear(x, w, b, *, tm=256, tn=256, tk=1024):
    """out = relu(x @ w + b); w is (in_features, out_features)."""
    return FusedLinearTPU(w, b, tm=tm, tn=tn, tk=tk)(x)


def _reference_bf16(x, w, b):
    # Apples-to-apples reference: bf16-quantized operands, f32 accumulation
    # (matches MXU numerics of the kernel).  PyTorch's f32 nn.Linear differs
    # from this only by bf16 operand rounding (~1e-3 relative).
    xq = x.astype(jnp.bfloat16).astype(jnp.float32)
    wq = w.astype(jnp.bfloat16).astype(jnp.float32)
    return jnp.maximum(xq @ wq + b.astype(jnp.float32), 0.0)


# TODO(synk): training-mode Dropout (random mask + 1/(1-p) scale via
# pltpu.prng_seed / pltpu.prng_random_bits) is not implemented; this is the
# eval-mode forward, where nn.Dropout is the identity.


if __name__ == "__main__":
    key = jax.random.PRNGKey(0)
    (k_x, k_w, k_b, k_x2, k_w2, k_b2, k_x3, k_w3, k_b3) = jax.random.split(key, 9)

    # ---- 1) small shapes consistent with FusedLinear (single-tile path) ----
    B, fin, fout = 8, 16, 32
    x = jax.random.normal(k_x, (B, fin), dtype=jnp.float32)
    w = (0.1 * jax.random.normal(k_w, (fin, fout))).astype(jnp.float32)
    b = (0.1 * jax.random.normal(k_b, (fout,))).astype(jnp.float32)

    out = jax.block_until_ready(fused_linear(x, w, b))
    ref = _reference_bf16(x, w, b)
    assert out.shape == (B, fout)
    assert out.dtype == x.dtype
    assert jnp.allclose(out, ref, atol=1e-3, rtol=1e-3), "mismatch (small)"

    # ---- 2) multi-tile, deliberately unaligned shapes (padding + grid path) ----
    B2, in2, out2 = 272, 300, 200
    x2 = jax.random.normal(k_x2, (B2, in2), dtype=jnp.float32)
    w2 = (0.05 * jax.random.normal(k_w2, (in2, out2))).astype(jnp.float32)
    b2 = (0.05 * jax.random.normal(k_b2, (out2,))).astype(jnp.float32)

    out2_ = jax.block_until_ready(fused_linear(x2, w2, b2, tm=128, tn=128, tk=128))
    ref2 = _reference_bf16(x2, w2, b2)
    assert out2_.shape == (B2, out2)
    assert jnp.allclose(out2_, ref2, atol=1e-3, rtol=1e-3), "mismatch (tiled)"

    # ---- 3) pre-padded-weight class path, fully aligned (no pad / slice ops) ----
    B3, in3, out3 = 128, 256, 512
    x3 = jax.random.normal(k_x3, (B3, in3), dtype=jnp.float32)
    w3 = (0.05 * jax.random.normal(k_w3, (in3, out3))).astype(jnp.float32)
    b3 = (0.05 * jax.random.normal(k_b3, (out3,))).astype(jnp.float32)

    layer = FusedLinearTPU(w3, b3)          # weights padded/cast once here
    out3_ = jax.block_until_ready(layer(x3))
    ref3 = _reference_bf16(x3, w3, b3)
    assert out3_.shape == (B3, out3)
    assert jnp.allclose(out3_, ref3, atol=1e-3, rtol=1e-3), "mismatch (aligned)"

    print("KERNEL_OK")
</pallas_src>

<mosaic_0001>
module attributes {stable_mosaic.version = 11 : i64} {
  func.func @fused_linear_kernel(%arg0: i32, %arg1: i32, %arg2: i32, %arg3: memref<16x128xbf16, #tpu.memory_space<vmem>>, %arg4: memref<128x128xbf16, #tpu.memory_space<vmem>>, %arg5: memref<1x128xf32, #tpu.memory_space<vmem>>, %arg6: memref<16x128xf32, #tpu.memory_space<vmem>>) attributes {dimension_semantics = [#tpu.dimension_semantics<parallel>, #tpu.dimension_semantics<parallel>, #tpu.dimension_semantics<arbitrary>], iteration_bounds = array<i64: 1, 1, 1>, scalar_prefetch = 0 : i64, scratch_operands = 0 : i64, tpu.core_type = #tpu.core_type<tc>, window_params = [{transform_indices = @transform_0, window_bounds = array<i64: 16, 128>}, {transform_indices = @transform_1, window_bounds = array<i64: 128, 128>}, {transform_indices = @transform_2, window_bounds = array<i64: 1, 128>}, {transform_indices = @transform_3, window_bounds = array<i64: 16, 128>}]} {
    %c0_i32 = arith.constant 0 : i32
    %0 = arith.cmpi eq, %arg2, %c0_i32 : i32
    %1 = arith.extui %0 : i1 to i32
    %c0_i32_0 = arith.constant 0 : i32
    %2 = arith.cmpi ne, %1, %c0_i32_0 : i32
    scf.if %2 {
      %cst_10 = arith.constant 0.000000e+00 : f32
      %12 = vector.broadcast %cst_10 : f32 to vector<16x128xf32>
      %c0_11 = arith.constant 0 : index
      %c0_12 = arith.constant 0 : index
      %13 = vector.load %arg6[%c0_11, %c0_12] : memref<16x128xf32, #tpu.memory_space<vmem>>, vector<16x128xf32>
      tpu.vector_store %arg6[%c0_11, %c0_12], %12 {strides = array<i32>} : memref<16x128xf32, #tpu.memory_space<vmem>>, vector<16x128xf32>,
    } else {
    }
    %c0 = arith.constant 0 : index
    %c0_1 = arith.constant 0 : index
    %3 = vector.load %arg6[%c0, %c0_1] : memref<16x128xf32, #tpu.memory_space<vmem>>, vector<16x128xf32>
    %c0_2 = arith.constant 0 : index
    %c0_3 = arith.constant 0 : index
    %4 = vector.load %arg3[%c0_2, %c0_3] : memref<16x128xbf16, #tpu.memory_space<vmem>>, vector<16x128xbf16>
    %c0_4 = arith.constant 0 : index
    %c0_5 = arith.constant 0 : index
    %5 = vector.load %arg4[%c0_4, %c0_5] : memref<128x128xbf16, #tpu.memory_space<vmem>>, vector<128x128xbf16>
    %cst = arith.constant dense<0.000000e+00> : vector<16x128xf32>
    %6 = tpu.matmul %4, %5, %cst {dimension_numbers = #tpu.dot_dimension_numbers<[1], [0], [0], [1], [0, 0, 1, 1], [], []>} : vector<16x128xbf16>, vector<128x128xbf16>, vector<16x128xf32> -> vector<16x128xf32>
    %7 = arith.addf %3, %6 : vector<16x128xf32>
    %c0_6 = arith.constant 0 : index
    %c0_7 = arith.constant 0 : index
    %8 = vector.load %arg6[%c0_6, %c0_7] : memref<16x128xf32, #tpu.memory_space<vmem>>, vector<16x128xf32>
    tpu.vector_store %arg6[%c0_6, %c0_7], %7 {strides = array<i32>} : memref<16x128xf32, #tpu.memory_space<vmem>>, vector<16x128xf32>,
    %c0_i32_8 = arith.constant 0 : i32
    %9 = arith.cmpi eq, %arg2, %c0_i32_8 : i32
    %10 = arith.extui %9 : i1 to i32
    %c0_i32_9 = arith.constant 0 : i32
    %11 = arith.cmpi ne, %10, %c0_i32_9 : i32
    scf.if %11 {
      %c0_10 = arith.constant 0 : index
      %c0_11 = arith.constant 0 : index
      %12 = vector.load %arg6[%c0_10, %c0_11] : memref<16x128xf32, #tpu.memory_space<vmem>>, vector<16x128xf32>
      %c0_12 = arith.constant 0 : index
      %c0_13 = arith.constant 0 : index
      %13 = vector.load %arg5[%c0_12, %c0_13] : memref<1x128xf32, #tpu.memory_space<vmem>>, vector<1x128xf32>
      %14 = vector.broadcast %13 : vector<1x128xf32> to vector<16x128xf32>
      %15 = arith.addf %12, %14 : vector<16x128xf32>
      %cst_14 = arith.constant 0.000000e+00 : f32
      %16 = vector.broadcast %cst_14 : f32 to vector<16x128xf32>
      %17 = arith.maximumf %15, %16 : vector<16x128xf32>
      %c0_15 = arith.constant 0 : index
      %c0_16 = arith.constant 0 : index
      %18 = vector.load %arg6[%c0_15, %c0_16] : memref<16x128xf32, #tpu.memory_space<vmem>>, vector<16x128xf32>
      tpu.vector_store %arg6[%c0_15, %c0_16], %17 {strides = array<i32>} : memref<16x128xf32, #tpu.memory_space<vmem>>, vector<16x128xf32>,
    } else {
    }
    return
  }
  func.func @transform_0(%arg0: i32, %arg1: i32, %arg2: i32) -> (i32, i32) {
    %c0_i32 = arith.constant 0 : i32
    return %arg0, %arg2 : i32, i32
  }
  func.func @transform_1(%arg0: i32, %arg1: i32, %arg2: i32) -> (i32, i32) {
    %c0_i32 = arith.constant 0 : i32
    return %arg2, %arg1 : i32, i32
  }
  func.func @transform_2(%arg0: i32, %arg1: i32, %arg2: i32) -> (i32, i32) {
    %c0_i32 = arith.constant 0 : i32
    %c0_i32_0 = arith.constant 0 : i32
    return %c0_i32, %arg1 : i32, i32
  }
  func.func @transform_3(%arg0: i32, %arg1: i32, %arg2: i32) -> (i32, i32) {
    %c0_i32 = arith.constant 0 : i32
    return %arg0, %arg1 : i32, i32
  }
}

</mosaic_0001>

<bundles_post_ra>
// kernel: tpu_custom_call.1
= control target key start
LH: loop header
LB: loop body
LE: loop exit
PB: predicated region body
PF: predicated region fallthrough
CT: control target
= control target key end

     0   :  { %8 = vsyncpa [#allocation3], 0  ;;  %s369_s0 = inlined_call_operand.hbm [shape: bf16[16,128], index: 0, kind: input, shape index: {}]   ;;  %s370_s1 = inlined_call_operand.hbm [shape: bf16[128,128], index: 1, kind: input, shape index: {}]   ;;  %s371_s2 = inlined_call_operand.vmem [shape: f32[1,128], index: 2, kind: input, shape index: {}]   ;;  %s372_s3 = inlined_call_operand.hbm [shape: f32[16,128], index: 3, kind: output, shape index: {}]  }
   0x1   :  { %9 = vsyncpa [#allocation6], 0 }
   0x2   :  { %10 = vsyncpa [#allocation4], 0  ;;  %s328_s12 = smov [#allocation2]  }
   0x3   :  { %s16_s13 = sshll.u32 %s328_s12, 4  ;;  %s17_s13 = int_to_ptr.vmem [resolvable:$true] %s16_s13 }
   0x4   :  { %s270_s14 = scalar_lea.vmem %s17_s13, 128  ;;  %p275_p1 = scmp.lt.s32.totalorder %s17_s13, %s17_s13 }
   0x5   :  { %p271_p0 = scmp.ne.s32.totalorder %s17_s13, %s270_s14  ;;  %p276_p2 = scmp.lt.s32.totalorder %s270_s14, %s270_s14 }
   0x7   :  { %p277_p3 = por %p276_p2, %p275_p1 }
   0x9   :  { %p278_p4 = pnand %p277_p3, %p271_p0 }
   0xb   :  { %281 = shalt.err (!%p278_p4)
}
   0xc   :  { %s329_s15 = smov 64   ;;  %s330_s16 = smov 4  }
   0xd   :  { %22 = dma.hbm_to_vmem [thread:$0]  %s369_s0, 128, %s17_s13, [#allocation3], %s329_s15, %s329_s15, %s330_s16  }
   0xe   :  { %s331_s19 = smov [#allocation5]  }
   0xf   :  { %s28_s20 = sshll.u32 %s331_s19, 4  ;;  %s29_s20 = int_to_ptr.vmem [resolvable:$true] %s28_s20 }
  0x10   :  { %s290_s21 = scalar_lea.vmem %s29_s20, 1024  ;;  %p295_p6 = scmp.lt.s32.totalorder %s29_s20, %s29_s20 }
  0x11   :  { %p291_p5 = scmp.ne.s32.totalorder %s29_s20, %s290_s21  ;;  %p296_p7 = scmp.lt.s32.totalorder %s290_s21, %s290_s21 }
  0x13   :  { %p297_p8 = por %p296_p7, %p295_p6 }
  0x15   :  { %p298_p9 = pnand %p297_p8, %p291_p5 }
  0x17   :  { %301 = shalt.err (!%p298_p9)
}
  0x18   :  { %34 = dma.hbm_to_vmem [thread:$0]  %s370_s1, 1024, %s29_s20, [#allocation6], %s329_s15, %s329_s15, %s330_s16  }
  0x19   :  { %322 = dma.done.wait [#allocation3], 128  }
  0x1a   :  { %323 = vsyncadd [#allocation3], 4294967168 }
  0x1b   :  { %324 = dma.done.wait [#allocation6], 1024  }
  0x1c   :  { %325 = vsyncadd [#allocation6], 4294966272  ;;  %v332_v0 = vmov 0.0   ;;  %vm333_vm0 = vmmov 0   ;;  %v253_v1 = vld [vmem:[#allocation5 + $0x38] sm:$0xff]   ;;  %v254_v2 = vld [vmem:[#allocation5 + $0x30] sm:$0xff]  }
  0x1d   :  { %224 = vmatprep.subr.bf16.mxu0 %v332_v0  ;;  %240 = vmatprep.mubr.msk.bf16.mxu0 %vm333_vm0, %v332_v0  ;;  %v255_v3 = vld [vmem:[#allocation5 + $0x28] sm:$0xff]   ;;  %v256_v4 = vld [vmem:[#allocation5 + $0x20] sm:$0xff]   ;;  %v257_v5 = vld [vmem:[#allocation5 + $0x18] sm:$0xff]   ;;  %s334_s24 = smov [#allocation7]  }
  0x1e   :  { %225 = vmatpush3.bf16.msra.mxu0 %v253_v1  ;;  %v258_v6 = vld [vmem:[#allocation5 + $0x10] sm:$0xff]   ;;  %v259_v7 = vld [vmem:[#allocation5 + $0x8] sm:$0xff]   ;;  %v260_v8 = vld [vmem:[#allocation5] sm:$0xff]   ;;  %s192_s25 = sshll.u32 %s334_s24, 4  ;;  %s193_s25 = int_to_ptr.vmem [resolvable:$true] %s192_s25 }
  0x1f   :  { %226 = vmatprep.subr.bf16.mxu0 %v332_v0  ;;  %v261_v9 = vld [vmem:[#allocation2] sm:$0xff]   ;;  %s302_s26 = scalar_lea.vmem %s193_s25, 256  ;;  %p307_p11 = scmp.lt.s32.totalorder %s193_s25, %s193_s25 }
  0x20   :  { %v214_v11 = vld [vmem:[%s371_s2] ss:$0 sm:$0xff]  ;;  %p303_p10 = scmp.ne.s32.totalorder %s193_s25, %s302_s26  ;;  %p308_p12 = scmp.lt.s32.totalorder %s302_s26, %s302_s26 }
  0x22   :  { %227 = vmatpush3.bf16.msra.mxu0 %v254_v2  ;;  %p309_p13 = por %p308_p12, %p307_p11 }
  0x23   :  { %228 = vmatprep.subr.bf16.mxu0 %v332_v0 }
  0x24   :  { %p310_p0 = pnand %p309_p13, %p303_p10 }
  0x26   :  { %229 = vmatpush3.bf16.msra.mxu0 %v255_v3 }
  0x27   :  { %230 = vmatprep.subr.bf16.mxu0 %v332_v0 }
  0x2a   :  { %231 = vmatpush3.bf16.msra.mxu0 %v256_v4 }
  0x2b   :  { %232 = vmatprep.subr.bf16.mxu0 %v332_v0 }
  0x2e   :  { %233 = vmatpush3.bf16.msra.mxu0 %v257_v5 }
  0x2f   :  { %234 = vmatprep.subr.bf16.mxu0 %v332_v0 }
  0x32   :  { %235 = vmatpush3.bf16.msra.mxu0 %v258_v6 }
  0x33   :  { %236 = vmatprep.subr.bf16.mxu0 %v332_v0 }
  0x36   :  { %237 = vmatpush3.bf16.msra.mxu0 %v259_v7 }
  0x37   :  { %238 = vmatprep.subr.bf16.mxu0 %v332_v0 }
  0x3a   :  { %239 = vmatpush3.bf16.msra.mxu0 %v260_v8 }
  0x3d   :  { %241 = vmatmul.mubr.bf16.vlgmr.msra.gmra.mxu0 %v261_v9 }
  0xfd   :  { %v158_v10 = vpop.f32.mrf.mxu0 }
  0xfe   :  { %v181_v13 = vadd.f32 %v214_v11, %v158_v10 }
  0xff   :  { %v242_v12 = vpop.f32.mrf.mxu0 }
 0x100   :  { %v183_v15 = vmax.f32 %v181_v13, 0.0 }
 0x101   :  { %v161_v14 = vpop.f32.mrf.mxu0 }
 0x102   :  { %v182_v17 = vadd.f32 %v214_v11, %v161_v14  ;;  %185 = vst [vmem:[#allocation7] sm:$0xff] %v183_v15 }
 0x103   :  { %v243_v16 = vpop.f32.mrf.mxu0 }
 0x104   :  { %v184_v18 = vmax.f32 %v182_v17, 0.0 }
 0x106   :  { %186 = vst [vmem:[#allocation7 + $0x8] sm:$0xff] %v184_v18 }
 0x107   :  { %313 = shalt.err (!%p310_p0)
}
 0x108   :  { %s335_s2 = smov 128   ;;  %s336_s27 = smov 8  }
 0x109   :  { %198 = dma.vmem_to_hbm [thread:$0]  %s193_s25, 256, %s372_s3, [#allocation4], %s335_s2, %s335_s2, %s336_s27  }
 0x10a   :  { %326 = dma.done.wait [#allocation4], 256  }
 0x10b   :  { %327 = vsyncadd [#allocation4], 4294967040 }
 0x10c   :  { %202 = vsyncpa [#allocation3], 1 }
 0x10d   :  { %203 = vsyncpa [#allocation6], 1 }
 0x10e   :  { %204 = vsyncpa [#allocation4], 1 }

</bundles_post_ra>
